<compile_context>
chip_gen: v7x
topology: tpu7x:2x2x1
jax: 0.10.0
libtpu: 0.0.40
codegen_flags: <defaults>
</compile_context>

<pallas_src>
import functools

import jax
import jax.numpy as jnp
from jax.experimental import pallas as pl
from jax.experimental.pallas import tpu as pltpu


# --------------------------------------------------------------------------- #
# Fused kernel: both GraphTrfmLayers run inside one pallas_call, one layer per
# grid step.  out_ref is revisited every step and carries the node features.
# --------------------------------------------------------------------------- #
def fused_graph_trfm_kernel(
    x_ref, ea_ref, s1_ref, d1_ref, d1t_ref, hh_ref,
    wqkvg_ref, we_ref, wo_ref, w1_ref, w2_ref, vec_ref, b1_ref,
    out_ref,
    *, D: int,
):
    f32 = jnp.float32
    bf16 = jnp.bfloat16
    dot = functools.partial(jnp.dot, preferred_element_type=jnp.float32)

    # Layer 0 consumes x; later layers consume the previous layer's output,
    # which stays resident in the revisited output block in VMEM.
    @pl.when(pl.program_id(0) == 0)
    def _():
        out_ref[...] = x_ref[...]

    h_in = out_ref[...].astype(f32)              # (N, D) layer input / residual
    hb = h_in.astype(bf16)

    S1 = s1_ref[...]                             # (E, N) f32 one-hot of src (exact)
    D1 = d1_ref[...]                             # (E, N) f32 one-hot of dst
    D1T = d1t_ref[...]                           # (N, E) f32
    HH = hh_ref[...]                             # (D, D) f32: 1 iff same head

    # ---------------- MultiHeadAttention2Layer ----------------
    # Fused [Q | K/sqrt(dh) | V | G] projection: one lane-dense (N, 4D) matmul.
    qkvg = dot(hb, wqkvg_ref[...])               # (N, 4D) f32
    Qh = qkvg[:, 0:D]                            # (N, D)
    KV = qkvg[:, D:3 * D]                        # (N, 2D) = [K | V]
    g_lin = qkvg[:, 3 * D:4 * D]                 # (N, D)  gate pre-activation

    Eh = dot(ea_ref[...], we_ref[...])           # (E, D)  edge projection

    # Exact f32 one-hot gathers (tiny matmuls; bf16 gives no win at these sizes).
    KV_src = dot(S1, KV)                         # (E, 2D) K_h, V_h gathered at src
    K_src = KV_src[:, 0:D]
    V_src = KV_src[:, D:2 * D]
    Q_dst = dot(D1, Qh)                          # (E, D)  Q_h gathered at dst

    score = K_src * Q_dst * Eh                   # (E, D); 1/sqrt(dh) folded into K
    # Per-head score sums broadcast back across each head's dh columns via one
    # lane-dense block-diagonal matmul (replaces (E, H) tensors / degenerate dots).
    score_h = dot(score, HH)                     # (E, D)

    # pyg_softmax over edges grouped by destination node (per head), stabilized
    # with the global per-head max (shift-invariant; avoids an (E, N, H) tensor).
    m = jnp.max(score_h, axis=0, keepdims=True)  # (1, D)
    ex = jnp.exp(score_h - m)                    # (E, D)
    seg_sum = dot(D1T, ex)                       # (N, D) per-destination sums
    sum_e = dot(D1, seg_sum)                     # (E, D) sums gathered back to edges
    attn = ex / (sum_e + f32(1e-16))             # (E, D)

    msg = V_src * attn                           # (E, D)
    wV = dot(D1T, msg)                           # (N, D) scatter-add at dst

    # ---------------- gate + output projection + residual + BN1 ----------------
    g = jax.nn.sigmoid(g_lin + vec_ref[0:1, :])  # (N, D);  dropout(p=0) = identity
    h = wV * g
    h = dot(h.astype(bf16), wo_ref[...]) + vec_ref[1:2, :]
    h = h_in + h                                 # residual 1

    eps = f32(1e-5)
    mu1 = jnp.mean(h, axis=0, keepdims=True)
    var1 = jnp.mean(jnp.square(h - mu1), axis=0, keepdims=True)
    h = (h - mu1) * jax.lax.rsqrt(var1 + eps) * vec_ref[2:3, :] + vec_ref[3:4, :]

    # ---------------- FFN + residual + BN2 ----------------
    h2 = jnp.maximum(dot(h.astype(bf16), w1_ref[...]) + b1_ref[...], 0.0)  # (N, 2D)
    h2 = dot(h2.astype(bf16), w2_ref[...]) + vec_ref[4:5, :]               # (N, D)
    h2 = h + h2                                  # residual 2

    mu2 = jnp.mean(h2, axis=0, keepdims=True)
    var2 = jnp.mean(jnp.square(h2 - mu2), axis=0, keepdims=True)
    h2 = (h2 - mu2) * jax.lax.rsqrt(var2 + eps) * vec_ref[5:6, :] + vec_ref[6:7, :]

    out_ref[...] = h2.astype(out_ref.dtype)


def pack_params(layer_params, dh):
    """Stack per-layer params, fuse Q|K|V|G, fold 1/sqrt(dh) into K, pack vectors."""
    inv = 1.0 / float(dh) ** 0.5
    bf16 = jnp.bfloat16

    def stack(fn):
        return jnp.stack([fn(p) for p in layer_params], axis=0)

    wqkvg = stack(lambda p: jnp.concatenate(
        [p["wq"], p["wk"] * inv, p["wv"], p["wg"]], axis=1)).astype(bf16)  # (L,D,4D)
    we = stack(lambda p: p["we"]).astype(bf16)                             # (L,D,D)
    wo = stack(lambda p: p["wo"]).astype(bf16)                             # (L,D,D)
    w1 = stack(lambda p: p["w1"]).astype(bf16)                             # (L,D,2D)
    w2 = stack(lambda p: p["w2"]).astype(bf16)                             # (L,2D,D)
    # Row layout: 0 bg, 1 bo, 2 bn1w, 3 bn1b, 4 b2, 5 bn2w, 6 bn2b, 7 pad.
    vec = stack(lambda p: jnp.concatenate(
        [p["bg"], p["bo"], p["bn1w"], p["bn1b"], p["b2"], p["bn2w"], p["bn2b"],
         jnp.zeros_like(p["bg"])], axis=0)).astype(jnp.float32)            # (L,8,D)
    b1 = stack(lambda p: p["b1"].reshape(1, -1)).astype(jnp.float32)       # (L,1,2D)
    return wqkvg, we, wo, w1, w2, vec, b1


def graph_transformer(x, edge_index, edge_attr, layer_params, *, num_heads):
    N, D = x.shape
    L = len(layer_params)
    dh = D // num_heads
    src, dst = edge_index[0], edge_index[1]

    # Glue (plain JAX): one-hot gather/scatter matrices (kept f32 -> exact gathers)
    # and the block-diagonal "same-head" matrix.
    S1 = jax.nn.one_hot(src, N, dtype=jnp.float32)             # (E, N)
    D1 = jax.nn.one_hot(dst, N, dtype=jnp.float32)             # (E, N)
    D1T = D1.T                                                 # (N, E)
    heads = jnp.arange(D) // dh
    HH = (heads[:, None] == heads[None, :]).astype(jnp.float32)  # (D, D)
    ea = edge_attr.astype(jnp.bfloat16)

    wqkvg, we, wo, w1, w2, vec, b1 = pack_params(layer_params, dh)

    inputs = (x, ea, S1, D1, D1T, HH, wqkvg, we, wo, w1, w2, vec, b1)

    def fixed2(a):     # whole 2-D array, constant block -> fetched once
        return pl.BlockSpec(a.shape, lambda i: (0, 0))

    def per_layer(a):  # leading layer axis walked by the grid (pipelined weights)
        return pl.BlockSpec((None,) + a.shape[1:], lambda i: (i, 0, 0))

    in_specs = [fixed2(x), fixed2(ea), fixed2(S1), fixed2(D1), fixed2(D1T), fixed2(HH),
                per_layer(wqkvg), per_layer(we), per_layer(wo),
                per_layer(w1), per_layer(w2), per_layer(vec), per_layer(b1)]

    grid_spec = pltpu.PrefetchScalarGridSpec(
        num_scalar_prefetch=0,
        grid=(L,),
        in_specs=in_specs,
        out_specs=pl.BlockSpec((N, D), lambda i: (0, 0)),
    )

    return pl.pallas_call(
        functools.partial(fused_graph_trfm_kernel, D=D),
        out_shape=jax.ShapeDtypeStruct((N, D), x.dtype),
        grid_spec=grid_spec,
        compiler_params=pltpu.CompilerParams(
            dimension_semantics=("arbitrary",),       # layer i+1 depends on layer i
            vmem_limit_bytes=32 * 1024 * 1024,
        ),
    )(*inputs)


# --------------------------------------------------------------------------- #
# Pure-JAX reference (module semantics): true per-destination pyg_softmax,
# segment scatter-add, training-mode BatchNorm.
# --------------------------------------------------------------------------- #
def graph_transformer_ref(x, edge_index, edge_attr, layer_params, *, num_heads):
    N, D = x.shape
    dh = D // num_heads
    src, dst = edge_index[0], edge_index[1]
    mm = functools.partial(jnp.dot, precision=jax.lax.Precision.HIGHEST)

    def bn(h, w, b, eps=1e-5):
        mu = jnp.mean(h, axis=0, keepdims=True)
        var = jnp.mean(jnp.square(h - mu), axis=0, keepdims=True)
        return (h - mu) / jnp.sqrt(var + eps) * w + b

    h = x
    for p in layer_params:
        h_in1 = h
        Qh = mm(h, p["wq"]).reshape(N, num_heads, dh)
        Kh = mm(h, p["wk"]).reshape(N, num_heads, dh)
        Vh = mm(h, p["wv"]).reshape(N, num_heads, dh)
        Eh = mm(edge_attr, p["we"]).reshape(-1, num_heads, dh)
        score = (Kh[src] * Qh[dst] / jnp.sqrt(float(dh)) * Eh).sum(-1, keepdims=True)
        smax = jax.ops.segment_max(score, dst, num_segments=N)
        ex = jnp.exp(score - smax[dst])
        ssum = jax.ops.segment_sum(ex, dst, num_segments=N)
        attn = ex / (ssum[dst] + 1e-16)
        msg = Vh[src] * attn
        wV = jax.ops.segment_sum(msg, dst, num_segments=N).reshape(N, D)
        g = jax.nn.sigmoid(mm(h, p["wg"]) + p["bg"])
        hv = wV * g
        hv = mm(hv, p["wo"]) + p["bo"]
        hv = bn(h_in1 + hv, p["bn1w"], p["bn1b"])
        t = jnp.maximum(mm(hv, p["w1"]) + p["b1"], 0.0)
        t = mm(t, p["w2"]) + p["b2"]
        h = bn(hv + t, p["bn2w"], p["bn2b"])
    return h


def init_layer_params(key, D):
    ks = jax.random.split(key, 16)
    nrm = lambda k, shp: 0.1 * jax.random.normal(k, shp, jnp.float32)
    return {
        # use_bias=False for Q/K/E/V (module default); O_h/G_h/FFN have biases.
        "wq": nrm(ks[0], (D, D)), "wk": nrm(ks[1], (D, D)),
        "we": nrm(ks[2], (D, D)), "wv": nrm(ks[3], (D, D)),
        "wg": nrm(ks[4], (D, D)), "bg": nrm(ks[5], (1, D)),
        "wo": nrm(ks[6], (D, D)), "bo": nrm(ks[7], (1, D)),
        "bn1w": 1.0 + nrm(ks[8], (1, D)), "bn1b": nrm(ks[9], (1, D)),
        "w1": nrm(ks[10], (D, 2 * D)), "b1": nrm(ks[11], (1, 2 * D)),
        "w2": nrm(ks[12], (2 * D, D)), "b2": nrm(ks[13], (1, D)),
        "bn2w": 1.0 + nrm(ks[14], (1, D)), "bn2b": nrm(ks[15], (1, D)),
    }


if __name__ == "__main__":
    # config: in_dim = out_dim = 32, num_heads = 4, num_layers = 2,
    #         dropout = 0.0, batch_norm = True, layer_norm = False,
    #         residual = True, use_bias = False, use_gate = True
    N_NODES, N_EDGES, D, H, L = 8, 16, 32, 4, 2

    key = jax.random.PRNGKey(0)
    kx, kea, ksrc, kdst, kp = jax.random.split(key, 5)

    x = jax.random.normal(kx, (N_NODES, D), jnp.float32)
    edge_attr = jax.random.normal(kea, (N_EDGES, D), jnp.float32)
    src = jax.random.randint(ksrc, (N_EDGES,), 0, N_NODES)
    dst = jax.random.randint(kdst, (N_EDGES,), 0, N_NODES)
    edge_index = jnp.stack([src, dst], axis=0)                 # (2, E)

    layer_keys = jax.random.split(kp, L)
    layer_params = [init_layer_params(k, D) for k in layer_keys]

    out = graph_transformer(x, edge_index, edge_attr, layer_params, num_heads=H)
    jax.block_until_ready(out)
    assert out.shape == (N_NODES, D)

    # Correctness vs. pure-JAX module semantics (loose bound: kernel uses bf16
    # MXU operands for the weight matmuls; outputs are BatchNorm'd, ~unit scale).
    ref = graph_transformer_ref(x, edge_index, edge_attr, layer_params, num_heads=H)
    err = float(jnp.max(jnp.abs(out - ref)))
    assert err < 1e-1, f"max abs error vs reference too large: {err}"

    print("KERNEL_OK")
</pallas_src>

<mosaic_0001>
module attributes {stable_mosaic.version = 11 : i64} {
  func.func @fused_graph_trfm_kernel(%arg0: i32, %arg1: memref<8x32xf32, #tpu.memory_space<vmem>>, %arg2: memref<16x32xbf16, #tpu.memory_space<vmem>>, %arg3: memref<16x8xf32, #tpu.memory_space<vmem>>, %arg4: memref<16x8xf32, #tpu.memory_space<vmem>>, %arg5: memref<8x16xf32, #tpu.memory_space<vmem>>, %arg6: memref<32x32xf32, #tpu.memory_space<vmem>>, %arg7: memref<1x32x128xbf16, #tpu.memory_space<vmem>>, %arg8: memref<1x32x32xbf16, #tpu.memory_space<vmem>>, %arg9: memref<1x32x32xbf16, #tpu.memory_space<vmem>>, %arg10: memref<1x32x64xbf16, #tpu.memory_space<vmem>>, %arg11: memref<1x64x32xbf16, #tpu.memory_space<vmem>>, %arg12: memref<1x8x32xf32, #tpu.memory_space<vmem>>, %arg13: memref<1x1x64xf32, #tpu.memory_space<vmem>>, %arg14: memref<8x32xf32, #tpu.memory_space<vmem>>) attributes {dimension_semantics = [#tpu.dimension_semantics<arbitrary>], iteration_bounds = array<i64: 2>, scalar_prefetch = 0 : i64, scratch_operands = 0 : i64, tpu.core_type = #tpu.core_type<tc>, window_params = [{pipeline_mode = #tpu.pipeline_mode<synchronous>, transform_indices = @transform_0, window_bounds = array<i64: 8, 32>}, {pipeline_mode = #tpu.pipeline_mode<synchronous>, transform_indices = @transform_1, window_bounds = array<i64: 16, 32>}, {pipeline_mode = #tpu.pipeline_mode<synchronous>, transform_indices = @transform_2, window_bounds = array<i64: 16, 8>}, {pipeline_mode = #tpu.pipeline_mode<synchronous>, transform_indices = @transform_3, window_bounds = array<i64: 16, 8>}, {pipeline_mode = #tpu.pipeline_mode<synchronous>, transform_indices = @transform_4, window_bounds = array<i64: 8, 16>}, {pipeline_mode = #tpu.pipeline_mode<synchronous>, transform_indices = @transform_5, window_bounds = array<i64: 32, 32>}, {transform_indices = @transform_6, window_bounds = array<i64: 1, 32, 128>}, {transform_indices = @transform_7, window_bounds = array<i64: 1, 32, 32>}, {transform_indices = @transform_8, window_bounds = array<i64: 1, 32, 32>}, {transform_indices = @transform_9, window_bounds = array<i64: 1, 32, 64>}, {transform_indices = @transform_10, window_bounds = array<i64: 1, 64, 32>}, {transform_indices = @transform_11, window_bounds = array<i64: 1, 8, 32>}, {transform_indices = @transform_12, window_bounds = array<i64: 1, 1, 64>}, {pipeline_mode = #tpu.pipeline_mode<synchronous>, transform_indices = @transform_13, window_bounds = array<i64: 8, 32>}]} {
    %c0_i32 = arith.constant 0 : i32
    %0 = arith.cmpi eq, %arg0, %c0_i32 : i32
    %1 = arith.extui %0 : i1 to i32
    %c0_i32_0 = arith.constant 0 : i32
    %2 = arith.cmpi ne, %1, %c0_i32_0 : i32
    scf.if %2 {
      %c0_71 = arith.constant 0 : index
      %c0_72 = arith.constant 0 : index
      %129 = vector.load %arg1[%c0_71, %c0_72] : memref<8x32xf32, #tpu.memory_space<vmem>>, vector<8x32xf32>
      %c0_73 = arith.constant 0 : index
      %c0_74 = arith.constant 0 : index
      %130 = vector.load %arg14[%c0_73, %c0_74] : memref<8x32xf32, #tpu.memory_space<vmem>>, vector<8x32xf32>
      tpu.vector_store %arg14[%c0_73, %c0_74], %129 {strides = array<i32>} : memref<8x32xf32, #tpu.memory_space<vmem>>, vector<8x32xf32>,
    } else {
    }
    %c0 = arith.constant 0 : index
    %c0_1 = arith.constant 0 : index
    %3 = vector.load %arg14[%c0, %c0_1] : memref<8x32xf32, #tpu.memory_space<vmem>>, vector<8x32xf32>
    %4 = arith.truncf %3 : vector<8x32xf32> to vector<8x32xbf16>
    %c0_2 = arith.constant 0 : index
    %c0_3 = arith.constant 0 : index
    %5 = vector.load %arg3[%c0_2, %c0_3] : memref<16x8xf32, #tpu.memory_space<vmem>>, vector<16x8xf32>
    %c0_4 = arith.constant 0 : index
    %c0_5 = arith.constant 0 : index
    %6 = vector.load %arg4[%c0_4, %c0_5] : memref<16x8xf32, #tpu.memory_space<vmem>>, vector<16x8xf32>
    %c0_6 = arith.constant 0 : index
    %c0_7 = arith.constant 0 : index
    %7 = vector.load %arg5[%c0_6, %c0_7] : memref<8x16xf32, #tpu.memory_space<vmem>>, vector<8x16xf32>
    %c0_8 = arith.constant 0 : index
    %c0_9 = arith.constant 0 : index
    %8 = vector.load %arg6[%c0_8, %c0_9] : memref<32x32xf32, #tpu.memory_space<vmem>>, vector<32x32xf32>
    %c0_10 = arith.constant 0 : index
    %c0_11 = arith.constant 0 : index
    %c0_12 = arith.constant 0 : index
    %9 = vector.load %arg7[%c0_10, %c0_11, %c0_12] : memref<1x32x128xbf16, #tpu.memory_space<vmem>>, vector<1x32x128xbf16>
    %10 = vector.shape_cast %9 : vector<1x32x128xbf16> to vector<32x128xbf16>
    %cst = arith.constant dense<0.000000e+00> : vector<8x128xf32>
    %11 = tpu.matmul %4, %10, %cst {dimension_numbers = #tpu.dot_dimension_numbers<[1], [0], [0], [1], [0, 0, 1, 1], [], []>} : vector<8x32xbf16>, vector<32x128xbf16>, vector<8x128xf32> -> vector<8x128xf32>
    %12 = vector.extract_strided_slice %11 {offsets = [0, 0], sizes = [8, 32], strides = [1, 1]} : vector<8x128xf32> to vector<8x32xf32>
    %13 = vector.extract_strided_slice %11 {offsets = [0, 32], sizes = [8, 64], strides = [1, 1]} : vector<8x128xf32> to vector<8x64xf32>
    %14 = vector.extract_strided_slice %11 {offsets = [0, 96], sizes = [8, 32], strides = [1, 1]} : vector<8x128xf32> to vector<8x32xf32>
    %c0_13 = arith.constant 0 : index
    %c0_14 = arith.constant 0 : index
    %15 = vector.load %arg2[%c0_13, %c0_14] : memref<16x32xbf16, #tpu.memory_space<vmem>>, vector<16x32xbf16>
    %c0_15 = arith.constant 0 : index
    %c0_16 = arith.constant 0 : index
    %c0_17 = arith.constant 0 : index
    %16 = vector.load %arg8[%c0_15, %c0_16, %c0_17] : memref<1x32x32xbf16, #tpu.memory_space<vmem>>, vector<1x32x32xbf16>
    %17 = vector.shape_cast %16 : vector<1x32x32xbf16> to vector<32x32xbf16>
    %cst_18 = arith.constant dense<0.000000e+00> : vector<16x32xf32>
    %18 = tpu.matmul %15, %17, %cst_18 {dimension_numbers = #tpu.dot_dimension_numbers<[1], [0], [0], [1], [0, 0, 1, 1], [], []>} : vector<16x32xbf16>, vector<32x32xbf16>, vector<16x32xf32> -> vector<16x32xf32>
    %cst_19 = arith.constant dense<0.000000e+00> : vector<16x64xf32>
    %19 = tpu.matmul %5, %13, %cst_19 {dimension_numbers = #tpu.dot_dimension_numbers<[1], [0], [0], [1], [0, 0, 1, 1], [], []>} : vector<16x8xf32>, vector<8x64xf32>, vector<16x64xf32> -> vector<16x64xf32>
    %20 = vector.extract_strided_slice %19 {offsets = [0, 0], sizes = [16, 32], strides = [1, 1]} : vector<16x64xf32> to vector<16x32xf32>
    %21 = vector.extract_strided_slice %19 {offsets = [0, 32], sizes = [16, 32], strides = [1, 1]} : vector<16x64xf32> to vector<16x32xf32>
    %cst_20 = arith.constant dense<0.000000e+00> : vector<16x32xf32>
    %22 = tpu.matmul %6, %12, %cst_20 {dimension_numbers = #tpu.dot_dimension_numbers<[1], [0], [0], [1], [0, 0, 1, 1], [], []>} : vector<16x8xf32>, vector<8x32xf32>, vector<16x32xf32> -> vector<16x32xf32>
    %23 = arith.mulf %20, %22 : vector<16x32xf32>
    %24 = arith.mulf %23, %18 : vector<16x32xf32>
    %cst_21 = arith.constant dense<0.000000e+00> : vector<16x32xf32>
    %25 = tpu.matmul %24, %8, %cst_21 {dimension_numbers = #tpu.dot_dimension_numbers<[1], [0], [0], [1], [0, 0, 1, 1], [], []>} : vector<16x32xf32>, vector<32x32xf32>, vector<16x32xf32> -> vector<16x32xf32>
    %cst_22 = arith.constant dense<0xFF800000> : vector<32xf32>
    %26 = vector.multi_reduction <maximumf>, %25, %cst_22 [0] : vector<16x32xf32> to vector<32xf32>
    %27 = vector.shape_cast %26 : vector<32xf32> to vector<1x32xf32>
    %28 = vector.broadcast %27 : vector<1x32xf32> to vector<16x32xf32>
    %29 = arith.subf %25, %28 : vector<16x32xf32>
    %30 = math.exp %29 : vector<16x32xf32>
    %cst_23 = arith.constant dense<0.000000e+00> : vector<8x32xf32>
    %31 = tpu.matmul %7, %30, %cst_23 {dimension_numbers = #tpu.dot_dimension_numbers<[1], [0], [0], [1], [0, 0, 1, 1], [], []>} : vector<8x16xf32>, vector<16x32xf32>, vector<8x32xf32> -> vector<8x32xf32>
    %cst_24 = arith.constant dense<0.000000e+00> : vector<16x32xf32>
    %32 = tpu.matmul %6, %31, %cst_24 {dimension_numbers = #tpu.dot_dimension_numbers<[1], [0], [0], [1], [0, 0, 1, 1], [], []>} : vector<16x8xf32>, vector<8x32xf32>, vector<16x32xf32> -> vector<16x32xf32>
    %cst_25 = arith.constant 1.000000e-16 : f32
    %33 = vector.broadcast %cst_25 : f32 to vector<16x32xf32>
    %34 = arith.addf %32, %33 : vector<16x32xf32>
    %35 = arith.divf %30, %34 : vector<16x32xf32>
    %36 = arith.mulf %21, %35 : vector<16x32xf32>
    %cst_26 = arith.constant dense<0.000000e+00> : vector<8x32xf32>
    %37 = tpu.matmul %7, %36, %cst_26 {dimension_numbers = #tpu.dot_dimension_numbers<[1], [0], [0], [1], [0, 0, 1, 1], [], []>} : vector<8x16xf32>, vector<16x32xf32>, vector<8x32xf32> -> vector<8x32xf32>
    %c0_27 = arith.constant 0 : index
    %c0_28 = arith.constant 0 : index
    %c0_29 = arith.constant 0 : index
    %38 = vector.load %arg12[%c0_27, %c0_28, %c0_29] : memref<1x8x32xf32, #tpu.memory_space<vmem>>, vector<1x1x32xf32>
    %39 = vector.shape_cast %38 : vector<1x1x32xf32> to vector<1x32xf32>
    %40 = vector.broadcast %39 : vector<1x32xf32> to vector<8x32xf32>
    %41 = arith.addf %14, %40 : vector<8x32xf32>
    %42 = arith.negf %41 : vector<8x32xf32>
    %43 = math.exp %42 : vector<8x32xf32>
    %cst_30 = arith.constant 1.000000e+00 : f32
    %44 = vector.broadcast %cst_30 : f32 to vector<8x32xf32>
    %45 = arith.addf %44, %43 : vector<8x32xf32>
    %46 = arith.divf %44, %45 : vector<8x32xf32>
    %47 = arith.mulf %37, %46 : vector<8x32xf32>
    %48 = arith.truncf %47 : vector<8x32xf32> to vector<8x32xbf16>
    %c0_31 = arith.constant 0 : index
    %c0_32 = arith.constant 0 : index
    %c0_33 = arith.constant 0 : index
    %49 = vector.load %arg9[%c0_31, %c0_32, %c0_33] : memref<1x32x32xbf16, #tpu.memory_space<vmem>>, vector<1x32x32xbf16>
    %50 = vector.shape_cast %49 : vector<1x32x32xbf16> to vector<32x32xbf16>
    %cst_34 = arith.constant dense<0.000000e+00> : vector<8x32xf32>
    %51 = tpu.matmul %48, %50, %cst_34 {dimension_numbers = #tpu.dot_dimension_numbers<[1], [0], [0], [1], [0, 0, 1, 1], [], []>} : vector<8x32xbf16>, vector<32x32xbf16>, vector<8x32xf32> -> vector<8x32xf32>
    %c0_35 = arith.constant 0 : index
    %c1 = arith.constant 1 : index
    %c0_36 = arith.constant 0 : index
    %52 = vector.load %arg12[%c0_35, %c1, %c0_36] : memref<1x8x32xf32, #tpu.memory_space<vmem>>, vector<1x1x32xf32>
    %53 = vector.shape_cast %52 : vector<1x1x32xf32> to vector<1x32xf32>
    %54 = vector.broadcast %53 : vector<1x32xf32> to vector<8x32xf32>
    %55 = arith.addf %51, %54 : vector<8x32xf32>
    %56 = arith.addf %3, %55 : vector<8x32xf32>
    %cst_37 = arith.constant dense<0.000000e+00> : vector<32xf32>
    %57 = vector.multi_reduction <add>, %56, %cst_37 [0] : vector<8x32xf32> to vector<32xf32>
    %58 = vector.shape_cast %57 : vector<32xf32> to vector<1x32xf32>
    %cst_38 = arith.constant 8.000000e+00 : f32
    %59 = vector.broadcast %cst_38 : f32 to vector<1x32xf32>
    %60 = arith.divf %58, %59 : vector<1x32xf32>
    %61 = vector.broadcast %60 : vector<1x32xf32> to vector<8x32xf32>
    %62 = arith.subf %56, %61 : vector<8x32xf32>
    %63 = arith.mulf %62, %62 : vector<8x32xf32>
    %cst_39 = arith.constant dense<0.000000e+00> : vector<32xf32>
    %64 = vector.multi_reduction <add>, %63, %cst_39 [0] : vector<8x32xf32> to vector<32xf32>
    %65 = vector.shape_cast %64 : vector<32xf32> to vector<1x32xf32>
    %cst_40 = arith.constant 8.000000e+00 : f32
    %66 = vector.broadcast %cst_40 : f32 to vector<1x32xf32>
    %67 = arith.divf %65, %66 : vector<1x32xf32>
    %68 = vector.broadcast %60 : vector<1x32xf32> to vector<8x32xf32>
    %69 = arith.subf %56, %68 : vector<8x32xf32>
    %cst_41 = arith.constant 9.99999974E-6 : f32
    %70 = vector.broadcast %cst_41 : f32 to vector<1x32xf32>
    %71 = arith.addf %67, %70 : vector<1x32xf32>
    %72 = math.rsqrt %71 : vector<1x32xf32>
    %73 = vector.broadcast %72 : vector<1x32xf32> to vector<8x32xf32>
    %74 = arith.mulf %69, %73 : vector<8x32xf32>
    %c0_42 = arith.constant 0 : index
    %c2 = arith.constant 2 : index
    %c0_43 = arith.constant 0 : index
    %75 = vector.load %arg12[%c0_42, %c2, %c0_43] : memref<1x8x32xf32, #tpu.memory_space<vmem>>, vector<1x1x32xf32>
    %76 = vector.shape_cast %75 : vector<1x1x32xf32> to vector<1x32xf32>
    %77 = vector.broadcast %76 : vector<1x32xf32> to vector<8x32xf32>
    %78 = arith.mulf %74, %77 : vector<8x32xf32>
    %c0_44 = arith.constant 0 : index
    %c3 = arith.constant 3 : index
    %c0_45 = arith.constant 0 : index
    %79 = vector.load %arg12[%c0_44, %c3, %c0_45] : memref<1x8x32xf32, #tpu.memory_space<vmem>>, vector<1x1x32xf32>
    %80 = vector.shape_cast %79 : vector<1x1x32xf32> to vector<1x32xf32>
    %81 = vector.broadcast %80 : vector<1x32xf32> to vector<8x32xf32>
    %82 = arith.addf %78, %81 : vector<8x32xf32>
    %83 = arith.truncf %82 : vector<8x32xf32> to vector<8x32xbf16>
    %c0_46 = arith.constant 0 : index
    %c0_47 = arith.constant 0 : index
    %c0_48 = arith.constant 0 : index
    %84 = vector.load %arg10[%c0_46, %c0_47, %c0_48] : memref<1x32x64xbf16, #tpu.memory_space<vmem>>, vector<1x32x64xbf16>
    %85 = vector.shape_cast %84 : vector<1x32x64xbf16> to vector<32x64xbf16>
    %cst_49 = arith.constant dense<0.000000e+00> : vector<8x64xf32>
    %86 = tpu.matmul %83, %85, %cst_49 {dimension_numbers = #tpu.dot_dimension_numbers<[1], [0], [0], [1], [0, 0, 1, 1], [], []>} : vector<8x32xbf16>, vector<32x64xbf16>, vector<8x64xf32> -> vector<8x64xf32>
    %c0_50 = arith.constant 0 : index
    %c0_51 = arith.constant 0 : index
    %c0_52 = arith.constant 0 : index
    %87 = vector.load %arg13[%c0_50, %c0_51, %c0_52] : memref<1x1x64xf32, #tpu.memory_space<vmem>>, vector<1x1x64xf32>
    %88 = vector.shape_cast %87 : vector<1x1x64xf32> to vector<1x64xf32>
    %89 = vector.broadcast %88 : vector<1x64xf32> to vector<8x64xf32>
    %90 = arith.addf %86, %89 : vector<8x64xf32>
    %cst_53 = arith.constant 0.000000e+00 : f32
    %91 = vector.broadcast %cst_53 : f32 to vector<8x64xf32>
    %92 = arith.maximumf %90, %91 : vector<8x64xf32>
    %93 = arith.truncf %92 : vector<8x64xf32> to vector<8x64xbf16>
    %c0_54 = arith.constant 0 : index
    %c0_55 = arith.constant 0 : index
    %c0_56 = arith.constant 0 : index
    %94 = vector.load %arg11[%c0_54, %c0_55, %c0_56] : memref<1x64x32xbf16, #tpu.memory_space<vmem>>, vector<1x64x32xbf16>
    %95 = vector.shape_cast %94 : vector<1x64x32xbf16> to vector<64x32xbf16>
    %cst_57 = arith.constant dense<0.000000e+00> : vector<8x32xf32>
    %96 = tpu.matmul %93, %95, %cst_57 {dimension_numbers = #tpu.dot_dimension_numbers<[1], [0], [0], [1], [0, 0, 1, 1], [], []>} : vector<8x64xbf16>, vector<64x32xbf16>, vector<8x32xf32> -> vector<8x32xf32>
    %c0_58 = arith.constant 0 : index
    %c4 = arith.constant 4 : index
    %c0_59 = arith.constant 0 : index
    %97 = vector.load %arg12[%c0_58, %c4, %c0_59] : memref<1x8x32xf32, #tpu.memory_space<vmem>>, vector<1x1x32xf32>
    %98 = vector.shape_cast %97 : vector<1x1x32xf32> to vector<1x32xf32>
    %99 = vector.broadcast %98 : vector<1x32xf32> to vector<8x32xf32>
    %100 = arith.addf %96, %99 : vector<8x32xf32>
    %101 = arith.addf %82, %100 : vector<8x32xf32>
    %cst_60 = arith.constant dense<0.000000e+00> : vector<32xf32>
    %102 = vector.multi_reduction <add>, %101, %cst_60 [0] : vector<8x32xf32> to vector<32xf32>
    %103 = vector.shape_cast %102 : vector<32xf32> to vector<1x32xf32>
    %cst_61 = arith.constant 8.000000e+00 : f32
    %104 = vector.broadcast %cst_61 : f32 to vector<1x32xf32>
    %105 = arith.divf %103, %104 : vector<1x32xf32>
    %106 = vector.broadcast %105 : vector<1x32xf32> to vector<8x32xf32>
    %107 = arith.subf %101, %106 : vector<8x32xf32>
    %108 = arith.mulf %107, %107 : vector<8x32xf32>
    %cst_62 = arith.constant dense<0.000000e+00> : vector<32xf32>
    %109 = vector.multi_reduction <add>, %108, %cst_62 [0] : vector<8x32xf32> to vector<32xf32>
    %110 = vector.shape_cast %109 : vector<32xf32> to vector<1x32xf32>
    %cst_63 = arith.constant 8.000000e+00 : f32
    %111 = vector.broadcast %cst_63 : f32 to vector<1x32xf32>
    %112 = arith.divf %110, %111 : vector<1x32xf32>
    %113 = vector.broadcast %105 : vector<1x32xf32> to vector<8x32xf32>
    %114 = arith.subf %101, %113 : vector<8x32xf32>
    %cst_64 = arith.constant 9.99999974E-6 : f32
    %115 = vector.broadcast %cst_64 : f32 to vector<1x32xf32>
    %116 = arith.addf %112, %115 : vector<1x32xf32>
    %117 = math.rsqrt %116 : vector<1x32xf32>
    %118 = vector.broadcast %117 : vector<1x32xf32> to vector<8x32xf32>
    %119 = arith.mulf %114, %118 : vector<8x32xf32>
    %c0_65 = arith.constant 0 : index
    %c5 = arith.constant 5 : index
    %c0_66 = arith.constant 0 : index
    %120 = vector.load %arg12[%c0_65, %c5, %c0_66] : memref<1x8x32xf32, #tpu.memory_space<vmem>>, vector<1x1x32xf32>
    %121 = vector.shape_cast %120 : vector<1x1x32xf32> to vector<1x32xf32>
    %122 = vector.broadcast %121 : vector<1x32xf32> to vector<8x32xf32>
    %123 = arith.mulf %119, %122 : vector<8x32xf32>
    %c0_67 = arith.constant 0 : index
    %c6 = arith.constant 6 : index
    %c0_68 = arith.constant 0 : index
    %124 = vector.load %arg12[%c0_67, %c6, %c0_68] : memref<1x8x32xf32, #tpu.memory_space<vmem>>, vector<1x1x32xf32>
    %125 = vector.shape_cast %124 : vector<1x1x32xf32> to vector<1x32xf32>
    %126 = vector.broadcast %125 : vector<1x32xf32> to vector<8x32xf32>
    %127 = arith.addf %123, %126 : vector<8x32xf32>
    %c0_69 = arith.constant 0 : index
    %c0_70 = arith.constant 0 : index
    %128 = vector.load %arg14[%c0_69, %c0_70] : memref<8x32xf32, #tpu.memory_space<vmem>>, vector<8x32xf32>
    tpu.vector_store %arg14[%c0_69, %c0_70], %127 {strides = array<i32>} : memref<8x32xf32, #tpu.memory_space<vmem>>, vector<8x32xf32>,
    return
  }
  func.func @transform_0(%arg0: i32) -> (i32, i32) {
    %c0_i32 = arith.constant 0 : i32
    %c0_i32_0 = arith.constant 0 : i32
    %c0_i32_1 = arith.constant 0 : i32
    return %c0_i32, %c0_i32_0 : i32, i32
  }
  func.func @transform_1(%arg0: i32) -> (i32, i32) {
    %c0_i32 = arith.constant 0 : i32
    %c0_i32_0 = arith.constant 0 : i32
    %c0_i32_1 = arith.constant 0 : i32
    return %c0_i32, %c0_i32_0 : i32, i32
  }
  func.func @transform_2(%arg0: i32) -> (i32, i32) {
    %c0_i32 = arith.constant 0 : i32
    %c0_i32_0 = arith.constant 0 : i32
    %c0_i32_1 = arith.constant 0 : i32
    return %c0_i32, %c0_i32_0 : i32, i32
  }
  func.func @transform_3(%arg0: i32) -> (i32, i32) {
    %c0_i32 = arith.constant 0 : i32
    %c0_i32_0 = arith.constant 0 : i32
    %c0_i32_1 = arith.constant 0 : i32
    return %c0_i32, %c0_i32_0 : i32, i32
  }
  func.func @transform_4(%arg0: i32) -> (i32, i32) {
    %c0_i32 = arith.constant 0 : i32
    %c0_i32_0 = arith.constant 0 : i32
    %c0_i32_1 = arith.constant 0 : i32
    return %c0_i32, %c0_i32_0 : i32, i32
  }
  func.func @transform_5(%arg0: i32) -> (i32, i32) {
    %c0_i32 = arith.constant 0 : i32
    %c0_i32_0 = arith.constant 0 : i32
    %c0_i32_1 = arith.constant 0 : i32
    return %c0_i32, %c0_i32_0 : i32, i32
  }
  func.func @transform_6(%arg0: i32) -> (i32, i32, i32) {
    %c0_i32 = arith.constant 0 : i32
    %c0_i32_0 = arith.constant 0 : i32
    %c0_i32_1 = arith.constant 0 : i32
    return %arg0, %c0_i32, %c0_i32_0 : i32, i32, i32
  }
  func.func @transform_7(%arg0: i32) -> (i32, i32, i32) {
    %c0_i32 = arith.constant 0 : i32
    %c0_i32_0 = arith.constant 0 : i32
    %c0_i32_1 = arith.constant 0 : i32
    return %arg0, %c0_i32, %c0_i32_0 : i32, i32, i32
  }
  func.func @transform_8(%arg0: i32) -> (i32, i32, i32) {
    %c0_i32 = arith.constant 0 : i32
    %c0_i32_0 = arith.constant 0 : i32
    %c0_i32_1 = arith.constant 0 : i32
    return %arg0, %c0_i32, %c0_i32_0 : i32, i32, i32
  }
  func.func @transform_9(%arg0: i32) -> (i32, i32, i32) {
    %c0_i32 = arith.constant 0 : i32
    %c0_i32_0 = arith.constant 0 : i32
    %c0_i32_1 = arith.constant 0 : i32
    return %arg0, %c0_i32, %c0_i32_0 : i32, i32, i32
  }
  func.func @transform_10(%arg0: i32) -> (i32, i32, i32) {
    %c0_i32 = arith.constant 0 : i32
    %c0_i32_0 = arith.constant 0 : i32
    %c0_i32_1 = arith.constant 0 : i32
    return %arg0, %c0_i32, %c0_i32_0 : i32, i32, i32
  }
  func.func @transform_11(%arg0: i32) -> (i32, i32, i32) {
    %c0_i32 = arith.constant 0 : i32
    %c0_i32_0 = arith.constant 0 : i32
    %c0_i32_1 = arith.constant 0 : i32
    return %arg0, %c0_i32, %c0_i32_0 : i32, i32, i32
  }
  func.func @transform_12(%arg0: i32) -> (i32, i32, i32) {
    %c0_i32 = arith.constant 0 : i32
    %c0_i32_0 = arith.constant 0 : i32
    %c0_i32_1 = arith.constant 0 : i32
    return %arg0, %c0_i32, %c0_i32_0 : i32, i32, i32
  }
  func.func @transform_13(%arg0: i32) -> (i32, i32) {
    %c0_i32 = arith.constant 0 : i32
    %c0_i32_0 = arith.constant 0 : i32
    %c0_i32_1 = arith.constant 0 : i32
    return %c0_i32, %c0_i32_0 : i32, i32
  }
}

</mosaic_0001>

<bundles_post_ra>
// kernel: tpu_custom_call.1
= control target key start
LH: loop header
LB: loop body
LE: loop exit
PB: predicated region body
PF: predicated region fallthrough
CT: control target
= control target key end

     0   :  { %s2693_s0 = inlined_call_operand.hbm [shape: f32[8,32], index: 0, kind: input, shape index: {}]   ;;  %s2694_s1 = inlined_call_operand.hbm [shape: bf16[16,32], index: 1, kind: input, shape index: {}]   ;;  %s2695_s2 = inlined_call_operand.vmem [shape: f32[16,8], index: 2, kind: input, shape index: {}]   ;;  %s2696_s3 = inlined_call_operand.vmem [shape: f32[16,8], index: 3, kind: input, shape index: {}]   ;;  %s2697_s4 = inlined_call_operand.hbm [shape: f32[8,16], index: 4, kind: input, shape index: {}]   ;;  %s2698_s5 = inlined_call_operand.vmem [shape: f32[32,32], index: 5, kind: input, shape index: {}]   ;;  %s2699_s6 = inlined_call_operand.vmem [shape: bf16[2,32,128], index: 6, kind: input, shape index: {}]   ;;  %s2700_s7 = inlined_call_operand.vmem [shape: bf16[2,32,32], index: 7, kind: input, shape index: {}]   ;;  %s2701_s8 = inlined_call_operand.vmem [shape: bf16[2,32,32], index: 8, kind: input, shape index: {}]   ;;  %s2702_s9 = inlined_call_operand.hbm [shape: bf16[2,32,64], index: 9, kind: input, shape index: {}]   ;;  %s2703_s10 = inlined_call_operand.vmem [shape: bf16[2,64,32], index: 10, kind: input, shape index: {}]   ;;  %s2704_s11 = inlined_call_operand.vmem [shape: f32[2,8,32], index: 11, kind: input, shape index: {}]   ;;  %s2705_s12 = inlined_call_operand.vmem [shape: f32[2,1,64], index: 12, kind: input, shape index: {}]   ;;  %s2706_s13 = inlined_call_operand.hbm [shape: f32[8,32], index: 13, kind: output, shape index: {}]  }
   0x1   :  { %2714 = sst [smem:[#allocation15_spill]] %s2693_s0 }
   0x2   :  { %2715 = sst [smem:[#allocation16_spill]] %s2694_s1 }
   0x3   :  { %2716 = sst [smem:[#allocation17_spill]] %s2695_s2 }
   0x4   :  { %2717 = sst [smem:[#allocation18_spill]] %s2696_s3 }
   0x5   :  { %2718 = sst [smem:[#allocation19_spill]] %s2697_s4 }
   0x6   :  { %2719 = sst [smem:[#allocation20_spill]] %s2698_s5 }
   0x7   :  { %2720 = sst [smem:[#allocation21_spill]] %s2704_s11 }
   0x8   :  { %2721 = sst [smem:[#allocation22_spill]] %s2706_s13 }
   0x9   :  { %18 = vsyncpa [#allocation3], 0 }
   0xa   :  { %19 = vsyncpa [#allocation6], 0 }
   0xb   :  { %20 = vsyncpa [#allocation9], 0 }
   0xc   :  { %22 = vsyncpa [#allocation9 + $0x1], 0 }
   0xd   :  { %23 = vsyncpa [#allocation4], 0  ;;  %s2309_s25 = smov 0   ;;  %s2311_s26 = smov 0  }
   0xe   :  { %s2313_s27 = smov 0   ;;  %s2315_s28 = smov 0  }
   0xf LB: > { %s2328_s29 = sadd.s32 4294967295, %s2225_s28   ;;  %p253_p0 = scmp.ne.s32.totalorder %s2217_s26, %s2213_s25  ;;  %s2225_s28 = sphi %s2315_s28, %s2747_s28   ;;  %s2221_s27 = sphi %s2313_s27, %s2746_s27   ;;  %s2217_s26 = sphi %s2311_s26, %s2745_s26   ;;  %s2213_s25 = sphi %s2309_s25, %s2744_s25  }
  0x10   : > { %p2708_p1 = scmp.eq.s32.totalorder %s2328_s29, 0  ;;  %p1716_p2 = scmp.ge.s32.totalorder %s2225_s28, 1 }
  0x11   : > { %p363_p3 = scmp.lt.s32.totalorder %s2225_s28, 3  ;;  %s2227_s15 = smov [#allocation5]  }
  0x12   : > { %p2337_p5 = por %p2708_p1, %p253_p0  ;;  %s386_s16 = sshll.u32 %s2227_s15, 4  ;;  %s2345_s16 = int_to_ptr.vmem [resolvable:$true] %s386_s16 }
  0x13   : > { %p2341_p6 = pnand %p1716_p2, %p363_p3  ;;  %s2228_s18 = smov [#allocation2]  }
  0x14   : > { %s2722_s30 = scalar_select %p2337_p5, 1, 0 }
  0x15   : > { %s2723_s14 = scalar_select %p2341_p6, 1, 0 }
  0x16   : > { %p1939_p7 = pneg %p2341_p6  ;;  %s376_s19 = sshll.u32 %s2228_s18, 4  ;;  %s2355_s19 = int_to_ptr.vmem [resolvable:$true] %s376_s19 }
  0x17   : > { %s2229_s20 = smov [#allocation7]   ;;  %s2725_s1 = sld [smem:[#allocation16_spill]] }
  0x18   : > { %p2351_p8 = pnand %p1939_p7, %p2708_p1  ;;  %s2357_s21 = sshll.u32 %s2229_s20, 4  ;;  %s407_s21 = int_to_ptr.vmem [resolvable:$true] %s2357_s21 }
  0x1a   : > { %p2367_p10 = pneg %p2351_p8 }
  0x1d   : > { %s2039_s24 = scalar_lea.hbm %s2725_s1, 128 }
  0x1e   : > { %p2040_p9 = scmp.ne.s32.totalorder %s2725_s1, %s2039_s24  ;;  %p2046_p13 = scmp.lt.u32.totalorder %s2039_s24, %s2725_s1 }
  0x20   : > { %p2042_p11 = pnand %p2367_p10, %p2040_p9 }
  0x22   : > { %p2043_p12 = pneg %p2042_p11 }
  0x24   : > { %p2048_p0 = pnand %p2046_p13, %p2043_p12 }
  0x26   : > { %2051 = shalt.err (!%p2048_p0)
}
  0x27   : > { %s2052_s22 = scalar_lea.vmem %s2345_s16, 128  ;;  %p2060_p4 = scmp.lt.s32.totalorder %s2345_s16, %s2345_s16 }
  0x28   : > { %p2053_p2 = scmp.ne.s32.totalorder %s2345_s16, %s2052_s22  ;;  %p2061_p1 = scmp.lt.s32.totalorder %s2052_s22, %s2052_s22 }
  0x2a   : > { %p2055_p3 = pnand %p2053_p2, %p2367_p10  ;;  %p2062_p9 = por %p2061_p1, %p2060_p4 }
  0x2c   : > { %p2056_p7 = pneg %p2055_p3 }
  0x2e   : > { %p2063_p11 = pnand %p2062_p9, %p2056_p7 }
  0x30   : > { %2066 = shalt.err (!%p2063_p11)
}
  0x31   : > { %s2230_s23 = smov 64   ;;  %s2231_s24 = smov 4  }
  0x32   : > { %1945 = dma.hbm_to_vmem [thread:$0]  (!%p2351_p8), %s2725_s1, 128, %s2345_s16, [#allocation6], %s2230_s23, %s2230_s23, %s2231_s24  }
  0x33   : > { %s2727_s0 = sld [smem:[#allocation15_spill]] }
  0x39   : > { %s2067_s22 = scalar_lea.hbm %s2727_s0, 128 }
  0x3a   : > { %p2068_p1 = scmp.ne.s32.totalorder %s2727_s0, %s2067_s22  ;;  %p2074_p13 = scmp.lt.u32.totalorder %s2067_s22, %s2727_s0 }
  0x3c   : > { %p2070_p4 = pnand %p2068_p1, %p2367_p10 }
  0x3e   : > { %p2071_p12 = pneg %p2070_p4 }
  0x40   : > { %p2076_p0 = pnand %p2074_p13, %p2071_p12 }
  0x42   : > { %2079 = shalt.err (!%p2076_p0)
}
  0x43   : > { %s2080_s16 = scalar_lea.vmem %s2355_s19, 128  ;;  %p2088_p9 = scmp.lt.s32.totalorder %s2355_s19, %s2355_s19 }
  0x44   : > { %p2081_p2 = scmp.ne.s32.totalorder %s2355_s19, %s2080_s16  ;;  %p2089_p11 = scmp.lt.s32.totalorder %s2080_s16, %s2080_s16 }
  0x46   : > { %p2083_p3 = pnand %p2081_p2, %p2367_p10  ;;  %p2090_p1 = por %p2089_p11, %p2088_p9 }
  0x48   : > { %p2084_p7 = pneg %p2083_p3 }
  0x4a   : > { %p2091_p4 = pnand %p2090_p1, %p2084_p7 }
  0x4c   : > { %2094 = shalt.err (!%p2091_p4)
}
  0x4d   : > { %1942 = dma.hbm_to_vmem [thread:$0]  (!%p2351_p8), %s2727_s0, 128, %s2355_s19, [#allocation3]  }
  0x4e   : > { %s2728_s4 = sld [smem:[#allocation19_spill]] }
  0x54   : > { %s2095_s25 = scalar_lea.hbm %s2728_s4, 128 }
  0x55   : > { %p2096_p12 = scmp.ne.s32.totalorder %s2728_s4, %s2095_s25  ;;  %p2102_p2 = scmp.lt.u32.totalorder %s2095_s25, %s2728_s4 }
  0x57   : > { %p2098_p13 = pnand %p2096_p12, %p2367_p10 }
  0x59   : > { %p2099_p0 = pneg %p2098_p13 }
  0x5b   : > { %p2104_p3 = pnand %p2102_p2, %p2099_p0 }
  0x5d   : > { %2107 = shalt.err (!%p2104_p3)
}
  0x5e   : > { %s2108_s16 = scalar_lea.vmem %s407_s21, 128  ;;  %p2116_p1 = scmp.lt.s32.totalorder %s407_s21, %s407_s21 }
  0x5f   : > { %p2109_p7 = scmp.ne.s32.totalorder %s407_s21, %s2108_s16  ;;  %p2117_p4 = scmp.lt.s32.totalorder %s2108_s16, %s2108_s16 }
  0x61   : > { %p2111_p9 = pnand %p2109_p7, %p2367_p10  ;;  %p2118_p5 = por %p2117_p4, %p2116_p1 }
  0x63   : > { %p2112_p11 = pneg %p2111_p9 }
  0x65   : > { %p2119_p6 = pnand %p2118_p5, %p2112_p11 }
  0x67   : > { %2122 = shalt.err (!%p2119_p6)
}
  0x68   : > { %1948 = dma.hbm_to_vmem [thread:$0]  (!%p2351_p8), %s2728_s4, 128, %s407_s21, [#allocation6]  }
  0x69   : > { %s2434_s13 = sadd.s32 1, %s2225_s28   ;;  %s240_s5 = sadd.s32 1, %s2221_s27 }
  0x6a   : > { %s237_s3 = ssub.s32 %s2225_s28, %s2434_s13  ;;  %p247_p6 = scmp.ne.s32.totalorder %s2221_s27, %s2217_s26 }
  0x6b   : > { %p238_p5 = scmp.eq.s32.totalorder %s237_s3, 0  ;;  %p248_p10 = scmp.eq.s32.totalorder %s2225_s28, 0 }
  0x6c   : > { %p1956_p12 = scmp.lt.s32.totalorder %s2225_s28, 2  ;;  %s444_s11 = sand.u32 1, %s2221_s27  }
  0x6d   : > { %s2444_s17 = scalar_select %p238_p5, %s2221_s27, %s240_s5  }
  0x6e   : > { %p249_p13 = por %p248_p10, %p247_p6  ;;  %s1721_s25 = sshll.u32 %s444_s11, 4 }
  0x6f   : > { %s1780_s15 = sshll.u32 %s2225_s28, 8  ;;  %s448_s21 = scalar_lea.vmem [#allocation8], %s1721_s25 }
  0x70   : > { %s2451_s22 = scalar_lea.hbm %s2702_s9, %s1780_s15  ;;  %s455_s16 = sshll.u32 %s448_s21, 4  ;;  %s2453_s16 = int_to_ptr.vmem [resolvable:$true] %s455_s16 }
  0x71   : > { %p2455_p8 = pnand %p1956_p12, %p249_p13  ;;  %s2459_s28 = scalar_lea.sflag [#allocation9], %s444_s11 }
  0x72   : > { %s2123_s2 = scalar_lea.hbm %s2451_s22, 256  ;;  %s2128_s25 = scalar_lea.hbm %s2702_s9, 512 }
  0x73   : > { %p2124_p0 = scmp.ne.s32.totalorder %s2451_s22, %s2123_s2  ;;  %p2125_p2 = pneg %p2455_p8 }
  0x74   : > { %p2129_p9 = scmp.lt.u32.totalorder %s2451_s22, %s2702_s9  ;;  %p2130_p11 = scmp.lt.u32.totalorder %s2128_s25, %s2123_s2 }
  0x75   : > { %p2126_p3 = pnand %p2125_p2, %p2124_p0  ;;  %p2132_p4 = scmp.lt.u32.totalorder %s2123_s2, %s2451_s22 }
  0x76   : > { %p2131_p1 = por %p2130_p11, %p2129_p9 }
  0x77   : > { %p2127_p7 = pneg %p2126_p3 }
  0x78   : > { %p2133_p5 = por %p2132_p4, %p2131_p1 }
  0x7a   : > { %p2134_p6 = pnand %p2133_p5, %p2127_p7 }
  0x7c   : > { %2137 = shalt.err (!%p2134_p6)
}
  0x7d   : > { %s2138_s11 = scalar_lea.vmem %s2453_s16, 256  ;;  %s2232_s20 = smov [#allocation8]  }
  0x7e   : > { %p2139_p10 = scmp.ne.s32.totalorder %s2453_s16, %s2138_s11  ;;  %s2143_s21 = sshll.u32 %s2232_s20, 4  ;;  %s2144_s21 = int_to_ptr.vmem [resolvable:$false] %s2143_s21 }
  0x7f   : > { %s2145_s3 = scalar_lea.vmem %s2144_s21, 512  ;;  %p2146_p0 = scmp.lt.s32.totalorder %s2453_s16, %s2144_s21 }
  0x80   : > { %p2141_p12 = pnand %p2139_p10, %p2125_p2  ;;  %p2147_p3 = scmp.lt.s32.totalorder %s2145_s3, %s2138_s11 }
  0x82   : > { %p2142_p13 = pneg %p2141_p12  ;;  %p2148_p9 = por %p2147_p3, %p2146_p0 }
  0x84   : > { %p2149_p11 = pnand %p2148_p9, %p2142_p13 }
  0x86   : > { %2152 = shalt.err (!%p2149_p11)
}
  0x87   : > { %1952 = dma.hbm_to_vmem [thread:$0]  (!%p2455_p8), %s2451_s22, 256, %s2453_s16, %s2459_s28, %s2230_s23, %s2230_s23, %s2231_s24  }
  0x88   : > { %p2730_p2 = scmp.ne.s32.totalorder %s2723_s14, 0 }
  0x89   : > { %p2731_p7 = scmp.eq.s32.totalorder (!%p2730_p2), %s2328_s29, 0 }
  0x8a   : > { %488 = sbr.rel (%p2730_p2) target bundleno = 2650 (0xa5a), region = 72 }
  0x91   : > { %2196 = dma.done.wait (%p2731_p7), [#allocation3], 128   ;;  %p2732_p1 = pmov %p2731_p7 }
  0x93   : > { %2198 = vsyncadd (%p2732_p1), [#allocation3], 4294967168  ;;  %p2733_p4 = pmov %p2732_p1 }
  0x94   : > { %p2734_p5 = pmov %p2732_p1 }
  0x95   : > { %2200 = dma.done.wait (%p2733_p4), [#allocation6], 256  }
  0x96   : > { %2202 = vsyncadd (%p2734_p5), [#allocation6], 4294967040  ;;  %s502_s19 = sand.u32 1, %s2217_s26   ;;  %p2735_p8 = scmp.ne.s32.totalorder %s2722_s30, 0 }
  0x97   : > { %s2501_s2 = sshll.u32 %s502_s19, 4  ;;  %s503_s14 = scalar_lea.sflag [#allocation9], %s502_s19 }
  0x98   : > { %2204 = dma.done.wait (%p2735_p8), %s503_s14, 256  }
  0x99   : > { %2206 = vsyncadd (%p2735_p8), %s503_s14, 4294967040  ;;  %p571_p6 = scmp.lt.s32.totalorder %s2328_s29, 1  ;;  %s2736_s15 = sld [smem:[#allocation21_spill]] }
  0x9a   : > { %p2737_p10 = scmp.ne.s32.totalorder %s2328_s29, 0 }
  0x9b   : > { %s2510_s24 = scalar_select %p571_p6, %s2328_s29, 1 }
  0x9c   : > { %602 = sbr.rel (%p2737_p10) target bundleno = 163 (0xa3), region = 92  ;;  %v603_v0 = vld [vmem:[#allocation2] sm:$0xff] (!%p2737_p10)  ;;  %vm604_vm0 = vcmask (!%p2737_p10), 261120  }
  0x9d   : > { %s1781_s22 = sshll.u32 %s2510_s24, 4  ;;  %s1784_s16 = sshll.u32 %s2510_s24, 5  ;;  %605 = vst.msk [vmem:[#allocation10] sm:$0xff] (!%p2737_p10), %vm604_vm0, %v603_v0 }
  0x9e   : > { %s575_s25 = scalar_lea.vmem %s2699_s6, %s1781_s22  ;;  %s2520_s30 = scalar_lea.vmem %s2700_s7, %s1781_s22 }
  0x9f   : > { %s2525_s21 = scalar_lea.vmem %s2701_s8, %s1781_s22  ;;  %s2530_s14 = scalar_lea.vmem %s2703_s10, %s1784_s16 }
  0xa0   : > { %s1737_s23 = sshll.u32 %s2510_s24, 3  ;;  %s597_s28 = scalar_lea.vmem %s2705_s12, %s2510_s24 }
  0xa1   : > { %s2540_s18 = scalar_lea.vmem %s2736_s15, %s1737_s23 }
  0xa3 PF: > { %v2010_v1 = vld [vmem:[%s575_s25] sm:$0xff]   ;;  %v2233_v2 = vmov 0.0   ;;  %v2011_v3 = vld [vmem:[%s575_s25 + $0x8] sm:$0xff]   ;;  %vm2234_vm1 = vmmov 0   ;;  %vm633_vm2 = vcmask 261120   ;;  %s2738_s4 = sld [smem:[#allocation17_spill]] }
  0xa4   : > { %1823 = vmatprep.subr.bf16.mxu0 %v2233_v2  ;;  %1827 = vmatprep.mubr.msk.bf16.mxu0 %vm2234_vm1, %v2233_v2  ;;  %v2547_v4 = vld [vmem:[#allocation10] sm:$0xff]  ;;  %v2012_v6 = vld [vmem:[%s2520_s30] sm:$0xff]   ;;  %vm748_vm3 = vcmask 64512   ;;  %v2013_v8 = vld [vmem:[%s2520_s30 + $0x8] sm:$0xff]   ;;  %s2235_s23 = smov 96   ;;  %s2739_s11 = sld [smem:[#allocation18_spill]] }
  0xa5   : > { %1824 = vmatpush3.bf16.msra.mxu0 %v2010_v1  ;;  %v607_v5 = vpack.c.bf16 %v2547_v4, %v2547_v4  ;;  %v2014_v9 = vld [vmem:[#allocation5] sm:$0xff]   ;;  %s2740_s15 = sld [smem:[#allocation20_spill]]  ;;  %v2236_v36 = vmov 0.0|0.0   ;;  %v612_v55 = vld [vmem:[#allocation7] sm:$0xff]  ;;  %vm1011_vm4 = vcmask 130048   ;;  %s2237_s20 = smov 32  }
  0xa6   : > { %1825 = vmatprep.subr.bf16.mxu0 %v2233_v2  ;;  %vm1479_vm5 = vcmask 523264   ;;  %s2238_s24 = smov [#allocation10]   ;;  %p1960_p12 = scmp.eq.s32.totalorder %s2328_s29, 1 }
  0xa9   : > { %1826 = vmatpush3.bf16.msra.mxu0 %v2011_v3  ;;  %v608_v7 = vld [vmem:[%s2738_s4] sm:$0xff]  ;;  %v609_v15 = vld [vmem:[%s2738_s4 + $0x8] sm:$0xff] }
  0xaa   : > { %1831 = vmatprep.subr.bf16.mxu0 %v2233_v2  ;;  %1841 = vmatprep.mubr.msk.f32.mxu1 %vm748_vm3, %v608_v7  ;;  %v610_v16 = vld [vmem:[%s2739_s11] sm:$0xff]  ;;  %v611_v17 = vld [vmem:[%s2739_s11 + $0x8] sm:$0xff] }
  0xab   : > { %v613_v18 = vld [vmem:[%s2740_s15] sm:$0xff]  ;;  %v614_v19 = vld [vmem:[%s2740_s15 + $0x8] sm:$0xff]  ;;  %v615_v23 = vld [vmem:[%s2740_s15 + $0x10] sm:$0xff] }
  0xac   : > { %1828 = vmatmul.mubr.msk.bf16.vlgmr.msra.gmra.mrb[0].mxu0 %vm633_vm2, %v607_v5  ;;  %v1907_v20 = vpack.c.bf16 %v614_v19, %v613_v18  ;;  %v616_v24 = vld [vmem:[%s2740_s15 + $0x18] sm:$0xff]  ;;  %v1756_v3 = vld [vmem:[%s2540_s18] ss:$0 sm:$0xff] }
  0xad   : > { %1835 = vmatprep.mubr.msk.bf16.mxu0 %vm2234_vm1, %v2233_v2  ;;  %1832 = vmatpush3.bf16.msra.mxu0 %v2012_v6  ;;  %v1911_v26 = vpack.c.bf16 %v616_v24, %v615_v23 }
  0xae   : > { %1833 = vmatprep.subr.bf16.mxu0 %v2233_v2 }
  0xb1   : > { %1834 = vmatpush3.bf16.msra.mxu0 %v2013_v8 }
  0xb2   : > { %1908 = vmatprep.subr.bf16.mxu0 %v1907_v20 }
  0xb4   : > { %1836 = vmatmul.mubr.msk.bf16.vlgmr.msra.gmra.mrb[4].mxu0 %vm633_vm2, %v2014_v9 }
  0xb5   : > { %1910 = vmatpush3.bf16.msra.mxu0 %v1907_v20 }
  0xb6   : > { %1912 = vmatprep.subr.bf16.mxu0 %v1911_v26 }
  0xb9   : > { %1914 = vmatpush3.bf16.msra.mxu0 %v1911_v26 }
  0xba   : > { %1918 = vmatprep.subr.bf16.mxu0 %v2236_v36 }
 0x17f   : > { %v2564_v10 = vpop.f32.mrb[0].mxu0 }
 0x180   : > { %745 = vrot.lane.b32.xlu0 %v2564_v10, %s2235_s23  ;;  %v1829_v11 = vpop.f32.mrb[1].mxu0 }
 0x181   : > { %v674_v12 = vpop.f32.mrb[2].mxu0 }
 0x182   : > { %v1830_v13 = vpop.f32.mrb[3].mxu0 }
 0x187   : > { %v737_v21 = vpop.f32.mrb[4].mxu0 }
 0x188   : > { %v1837_v22 = vpop.f32.mrb[5].mxu0 }
 0x189   : > { %v740_v25 = vpop.f32.mrb[6].mxu0 }
 0x18a   : > { %v1838_v27 = vpop.f32.mrb[7].mxu0 }
 0x1f2   : > { %v746_v14 = vpop.permute.xlu0 %745 }
 0x1f3   : > { %1839 = vmatprep.subr.mxu1 %v746_v14 }
 0x1f4   : > { %1840 = vmatpush3.msra.mxu1 %v746_v14 }
 0x1f5   : > { %1842 = vmatmul.mubr.msk.f32.vlgmr.msra.gmra.mrb[0].mxu1 %vm748_vm3, %v609_v15  ;;  %1844 = vmatprep.subr.mxu1 %v2564_v10  ;;  %v2015_v15 = vld [vmem:[%s2525_s21] sm:$0xff]  }
 0x1f6   : > { %1845 = vmatpush3.msra.mxu1 %v2564_v10  ;;  %1846 = vmatprep.mubr.msk.f32.mxu1 %vm748_vm3, %v610_v16 }
 0x1f7   : > { %1915 = vmatprep.subr.bf16.mxu1 %v2236_v36 }
 0x1f9   : > { %1847 = vmatmul.mubr.msk.f32.vlgmr.msra.gmra.mrb[2].mxu1 %vm748_vm3, %v611_v17 }
 0x1fa   : > { %1864 = vmatprep.mubr.msk.f32.mxu1 %vm2234_vm1, %v2233_v2 }
 0x2c8   : > { %v1843_v28 = vpop.f32.mrb[0].mxu1 }
 0x2c9   : > { %v2596_v29 = vpop.f32.mrb[1].mxu1 }
 0x2cc   : > { %v1848_v30 = vpop.f32.mrb[2].mxu1 }
 0x2cd   : > { %v912_v31 = vmul.f32 %v1848_v30, %v1843_v28  ;;  %v902_v32 = vpop.f32.mrb[3].mxu1  ;;  %v2020_v30 = vld [vmem:[%s2530_s14 + $0x8] sm:$0xff]  }
 0x2ce   : > { %v911_v33 = vmul.f32 %v902_v32, %v2596_v29 }
 0x2cf   : > { %v914_v34 = vmul.f32 %v912_v31, %v740_v25  ;;  %v1758_v31 = vld [vmem:[%s2540_s18 + $0x1] ss:$0 sm:$0xff] }
 0x2d0   : > { %v913_v35 = vmul.f32 %v911_v33, %v737_v21 }
 0x2d2   : > { %1857 = vmatprep.mubr.msk.f32.mxu0 %vm633_vm2, %v913_v35 }
 0x2d3   : > { %1858 = vmatmul.mubr.msk.f32.vlgmr.msra.gmra.mrb[8].mxu0 %vm633_vm2, %v914_v34 }
 0x2d4   : > { %1876 = vmatprep.mubr.msk.f32.mxu0 %vm2234_vm1, %v2233_v2 }
 0x3a6   : > { %v1859_v37 = vpop.f32.mrb[8].mxu0 }
 0x3a7   : > { %v997_v38 = vsel %vm633_vm2, %v1859_v37, -inf  ;;  %v987_v39 = vpop.f32.mrb[9].mxu0 }
 0x3a8   : > { %v996_v40 = vsel %vm633_vm2, %v987_v39, -inf }
 0x3a9   : > { %v998_v41 = vmax.f32 %v996_v40, %v997_v38 }
 0x3ab   : > { %v999_v42 = vrot.slane %v998_v41, 4 }
 0x3ad   : > { %v1000_v43 = vmax.f32 %v998_v41, %v999_v42 }
 0x3af   : > { %v1001_v44 = vrot.slane %v1000_v43, 2 }
 0x3b1   : > { %v1002_v45 = vmax.f32 %v1000_v43, %v1001_v44 }
 0x3b3   : > { %v1003_v46 = vrot.slane %v1002_v45, 1 }
 0x3b5   : > { %v1004_v47 = vmax.f32 %v1002_v45, %v1003_v46 }
 0x3b7   : > { %v1005_v48 = vsub.f32 %v987_v39, %v1004_v47  ;;  %v1006_v49 = vsub.f32 %v1859_v37, %v1004_v47 }
 0x3b9   : > { %v1007_v50 = vmul.f32 1.442695, %v1005_v48  ;;  %v1009_v51 = vmul.f32 1.442695, %v1006_v49 }
 0x3bb   : > { %2023 = vpow2.f32 %v1007_v50 }
 0x3bc   : > { %2025 = vpow2.f32 %v1009_v51 }
 0x3c5   : > { %v2024_v52 = vpop.eup %2023 }
 0x3c6   : > { %v2026_v53 = vpop.eup %2025 }
 0x3c7   : > { %v1916_v54 = vpack.c.bf16 %v2026_v53, %v2024_v52 }
 0x3c9   : > { %1917 = vmatpush3.bf16.msra.mxu1 %v1916_v54 }
 0x3cc   : > { %1865 = vmatmul.mubr.msk.f32.vlgmr.msra.gmra.mrb[4].mxu1 %vm1011_vm4, %v612_v55 }
 0x3cd   : > { %1869 = vmatprep.mubr.msk.f32.mxu1 %vm748_vm3, %v610_v16 }
 0x49f   : > { %v1081_v56 = vpop.f32.mrb[4].mxu1 }
 0x4a0   : > { %v1866_v57 = vpop.f32.mrb[5].mxu1  ;;  %1867 = vmatprep.subr.mxu1 %v1081_v56 }
 0x4a1   : > { %1868 = vmatpush3.msra.mxu1 %v1081_v56  ;;  %v1762_v57 = vld [vmem:[%s2540_s18 + $0x2] ss:$0 sm:$0xff] }
 0x4a2   : > { %1870 = vmatmul.mubr.msk.f32.vlgmr.msra.gmra.mrb[6].mxu1 %vm748_vm3, %v611_v17  ;;  %1879 = vmatprep.subr.bf16.mxu1 %v2233_v2 }
 0x4a3   : > { %1883 = vmatprep.mubr.msk.bf16.mxu1 %vm2234_vm1, %v2233_v2  ;;  %1880 = vmatpush3.bf16.msra.mxu1 %v2015_v15 }
 0x4a4   : > { %1881 = vmatprep.subr.bf16.mxu1 %v2233_v2 }
 0x575   : > { %v1871_v58 = vpop.f32.mrb[6].mxu1 }
 0x576   : > { %v1157_v59 = vadd.f32 1e-16, %v1871_v58  ;;  %v1151_v60 = vpop.f32.mrb[7].mxu1 }
 0x577   : > { %v1152_v61 = vadd.f32 1e-16, %v1151_v60 }
 0x578   : > { %2027 = vrcp.f32 %v1157_v59  ;;  %v1763_v59 = vld [vmem:[%s2540_s18 + $0x3] ss:$0 sm:$0xff] }
 0x579   : > { %2029 = vrcp.f32 %v1152_v61 }
 0x582   : > { %v2028_v62 = vpop.eup %2027 }
 0x583   : > { %v2030_v63 = vpop.eup %2029  ;;  %v1163_v0 = vmul.f32 %v2028_v62, %v2026_v53 }
 0x584   : > { %v1161_v1 = vmul.f32 %v2030_v63, %v2024_v52  ;;  %v2021_v63 = vld [vmem:[%s2530_s14 + $0x10] sm:$0xff]  }
 0x585   : > { %1168 = vrot.lane.b32.xlu1 %v1163_v0, %s2237_s20  ;;  %v2022_v0 = vld [vmem:[%s2530_s14 + $0x18] sm:$0xff]  }
 0x586   : > { %1166 = vrot.lane.b32.xlu0 %v1161_v1, %s2237_s20  ;;  %v1764_v1 = vld [vmem:[%s597_s28] ss:$0 sm:$0xff] }
 0x58a   : > { %1258 = vrot.lane.b32.xlu0 %v1756_v3, %s2235_s23 }
 0x5f7   : > { %v1169_v5 = vpop.permute.xlu1 %1168 }
 0x5f8   : > { %v1173_v6 = vmul.f32 %v1843_v28, %v1169_v5  ;;  %v1167_v7 = vpop.permute.xlu0 %1166 }
 0x5f9   : > { %v1172_v8 = vmul.f32 %v1167_v7, %v2596_v29  ;;  %v2019_v29 = vld [vmem:[%s2530_s14] sm:$0xff]   ;;  %s1565_s14 = sshll.u32 %s2238_s24, 4  ;;  %s1566_s14 = int_to_ptr.vmem [resolvable:$true] %s1565_s14 }
 0x5fa   : > { %s2153_s28 = scalar_lea.vmem %s1566_s14, 128  ;;  %p2160_p9 = scmp.lt.s32.totalorder %s1566_s14, %s1566_s14 }
 0x5fb   : > { %v2005_v9 = vpack.i.bf16 %v1173_v6, %v1172_v8  ;;  %p2154_p13 = scmp.ne.s32.totalorder %s1566_s14, %s2153_s28  ;;  %p2161_p11 = scmp.lt.s32.totalorder %s2153_s28, %s2153_s28 }
 0x5fc   : > { %v1259_v11 = vpop.permute.xlu0 %1258 }
 0x5fd   : > { %v1261_v12 = vadd.f32 %v1259_v11, %v2564_v10  ;;  %2006 = vrot.lane.b32.xlu1 %v2005_v9, %s2235_s23  ;;  %v2016_v10 = vld [vmem:[%s2525_s21 + $0x8] sm:$0xff]   ;;  %s2741_s23 = scalar_lea.vmem [#allocation8], %s2501_s2  ;;  %p2155_p0 = pnand %p2154_p13, %p1960_p12 }
 0x5fe   : > { %1882 = vmatpush3.bf16.msra.mxu1 %v2016_v10  ;;  %v2017_v27 = vld [vmem:[%s2741_s23] sm:$0xff]   ;;  %s2742_s21 = smov %s2741_s23  ;;  %p2162_p2 = por %p2161_p11, %p2160_p9 }
 0x5ff   : > { %v1757_v13 = vmul.f32 -1.442695, %v1261_v12  ;;  %1895 = vmatprep.subr.bf16.mxu1 %v2233_v2  ;;  %v2018_v28 = vld [vmem:[%s2742_s21 + $0x8] sm:$0xff]   ;;  %v1768_v12 = vld [vmem:[%s2540_s18 + $0x4] ss:$0 sm:$0xff]  ;;  %p2156_p3 = pneg %p2155_p0 }
 0x601   : > { %2031 = vpow2.f32 %v1757_v13  ;;  %p2163_p7 = pnand %p2162_p2, %p2156_p3 }
 0x60b   : > { %v2032_v14 = vpop.eup %2031 }
 0x60c   : > { %v1265_v16 = vadd.f32 1.0, %v2032_v14 }
 0x60e   : > { %2033 = vrcp.f32 %v1265_v16 }
 0x618   : > { %v2034_v17 = vpop.eup %2033 }
 0x619   : > { %1269 = vrot.lane.b32.xlu1 %v2034_v17, %s2237_s20 }
 0x66f   : > { %v2007_v18 = vpop.permute.xlu1 %2006 }
 0x670   : > { %v2009_v19 = vunpack.i.h.bf16 %v2007_v18  ;;  %v2008_v20 = vunpack.i.l.bf16 %v2007_v18 }
 0x672   : > { %v1919_v21 = vpack.c.bf16 %v2009_v19, %v2008_v20 }
 0x674   : > { %1920 = vmatpush3.bf16.msra.mxu0 %v1919_v21 }
 0x675   : > { %1887 = vmatprep.subr.bf16.mxu0 %v2233_v2 }
 0x677   : > { %1877 = vmatmul.mubr.msk.f32.vlgmr.msra.gmra.mrb[10].mxu0 %vm1011_vm4, %v612_v55 }
 0x678   : > { %1891 = vmatprep.mubr.msk.bf16.mxu0 %vm2234_vm1, %v2233_v2  ;;  %1888 = vmatpush3.bf16.msra.mxu0 %v2017_v27 }
 0x679   : > { %1889 = vmatprep.subr.bf16.mxu0 %v2233_v2 }
 0x67c   : > { %1890 = vmatpush3.bf16.msra.mxu0 %v2018_v28 }
 0x68b   : > { %v1270_v22 = vpop.permute.xlu1 %1269 }
 0x74a   : > { %v1248_v23 = vpop.f32.mrb[10].mxu0 }
 0x74b   : > { %v1272_v24 = vmul.f32 %v1270_v22, %v1248_v23  ;;  %v1878_v25 = vpop.f32.mrb[11].mxu0 }
 0x74d   : > { %v1273_v26 = vpack.c.bf16 %v1272_v24, %v1272_v24 }
 0x74f   : > { %1884 = vmatmul.mubr.msk.bf16.vlgmr.msra.gmra.mrb[8].mxu1 %vm633_vm2, %v1273_v26 }
 0x750   : > { %1903 = vmatprep.mubr.msk.bf16.mxu1 %vm2234_vm1, %v2233_v2  ;;  %1896 = vmatpush3.bf16.msra.mxu1 %v2019_v29 }
 0x751   : > { %1897 = vmatprep.subr.bf16.mxu1 %v2233_v2 }
 0x754   : > { %1898 = vmatpush3.bf16.msra.mxu1 %v2020_v30 }
 0x755   : > { %1899 = vmatprep.subr.bf16.mxu1 %v2233_v2 }
 0x758   : > { %1900 = vmatpush3.bf16.msra.mxu1 %v2021_v63 }
 0x759   : > { %1901 = vmatprep.subr.bf16.mxu1 %v2233_v2 }
 0x75c   : > { %1902 = vmatpush3.bf16.msra.mxu1 %v2022_v0 }
 0x822   : > { %v1332_v32 = vpop.f32.mrb[8].mxu1 }
 0x823   : > { %v1333_v33 = vadd.f32 %v1758_v31, %v1332_v32  ;;  %v1885_v34 = vpop.f32.mrb[9].mxu1 }
 0x824   : > { %v1335_v35 = vpop.f32.mrb[10].mxu1 }
 0x825   : > { %v1338_v36 = vadd.f32 %v1333_v33, %v2547_v4  ;;  %v1886_v37 = vpop.f32.mrb[11].mxu1 }
 0x826   : > { %v1774_v37 = vld [vmem:[%s2540_s18 + $0x5] ss:$0 sm:$0xff] }
 0x827   : > { %v1339_v38 = vsel %vm633_vm2, %v1338_v36, 0.0 }
 0x828   : > { %v1340_v39 = vrot.slane %v1339_v38, 4 }
 0x82a   : > { %v1341_v40 = vadd.f32 %v1340_v39, %v1339_v38  ;;  %v1775_v39 = vld [vmem:[%s2540_s18 + $0x6] ss:$0 sm:$0xff] }
 0x82c   : > { %v1342_v41 = vrot.slane %v1341_v40, 2 }
 0x82e   : > { %v1343_v42 = vadd.f32 %v1342_v41, %v1341_v40 }
 0x830   : > { %v1344_v43 = vrot.slane %v1343_v42, 1 }
 0x832   : > { %v1345_v44 = vadd.f32 %v1344_v43, %v1343_v42 }
 0x834   : > { %v1347_v45 = vmul.f32 0.125, %v1345_v44 }
 0x836   : > { %v1348_v46 = vsub.f32 %v1338_v36, %v1347_v45 }
 0x838   : > { %v1349_v47 = vmul.f32 %v1348_v46, %v1348_v46 }
 0x83a   : > { %v1350_v48 = vsel %vm633_vm2, %v1349_v47, 0.0 }
 0x83b   : > { %v1351_v49 = vrot.slane %v1350_v48, 4 }
 0x83d   : > { %v1352_v50 = vadd.f32 %v1351_v49, %v1350_v48 }
 0x83f   : > { %v1353_v4 = vrot.slane %v1352_v50, 2 }
 0x841   : > { %v1354_v51 = vadd.f32 %v1353_v4, %v1352_v50 }
 0x843   : > { %v1355_v52 = vrot.slane %v1354_v51, 1 }
 0x845   : > { %v1356_v53 = vadd.f32 %v1355_v52, %v1354_v51 }
 0x847   : > { %v1357_v54 = vmul.f32 0.125, %v1356_v53 }
 0x849   : > { %v1358_v55 = vadd.f32 1e-05, %v1357_v54 }
 0x84b   : > { %2035 = vrsqrt.f32 %v1358_v55 }
 0x855   : > { %v2036_v56 = vpop.eup %2035 }
 0x856   : > { %v1360_v58 = vmul.f32 %v2036_v56, %v1348_v46 }
 0x858   : > { %v1366_v60 = vmul.f32 %v1762_v57, %v1360_v58 }
 0x85a   : > { %v1372_v61 = vadd.f32 %v1763_v59, %v1366_v60 }
 0x85c   : > { %v1373_v62 = vpack.c.bf16 %v1372_v61, %v1372_v61 }
 0x85e   : > { %1892 = vmatmul.mubr.msk.bf16.vlgmr.msra.gmra.mrb[12].mxu0 %vm633_vm2, %v1373_v62 }
 0x931   : > { %v1434_v3 = vpop.f32.mrb[12].mxu0 }
 0x932   : > { %v1435_v5 = vadd.f32 %v1764_v1, %v1434_v3  ;;  %v1893_v6 = vpop.f32.mrb[13].mxu0 }
 0x933   : > { %v1437_v7 = vpop.f32.mrb[14].mxu0 }
 0x934   : > { %v1440_v8 = vmax.f32 %v1435_v5, 0.0  ;;  %v1894_v9 = vpop.f32.mrb[15].mxu0 }
 0x936   : > { %v1441_v11 = vpack.c.bf16 %v1440_v8, %v1440_v8 }
 0x938   : > { %1904 = vmatmul.mubr.msk.bf16.vlgmr.msra.gmra.mrb[12].mxu1 %vm1479_vm5, %v1441_v11 }
 0xa0b   : > { %v1517_v13 = vpop.f32.mrb[12].mxu1 }
 0xa0c   : > { %v1518_v14 = vadd.f32 %v1768_v12, %v1517_v13  ;;  %v1905_v2 = vpop.f32.mrb[13].mxu1 }
 0xa0d   : > { %v1520_v15 = vpop.f32.mrb[14].mxu1 }
 0xa0e   : > { %v1523_v16 = vadd.f32 %v1518_v14, %v1372_v61  ;;  %v1906_v17 = vpop.f32.mrb[15].mxu1 }
 0xa10   : > { %v1524_v18 = vsel %vm633_vm2, %v1523_v16, 0.0 }
 0xa11   : > { %v1525_v19 = vrot.slane %v1524_v18, 4 }
 0xa13   : > { %v1526_v20 = vadd.f32 %v1525_v19, %v1524_v18 }
 0xa15   : > { %v1527_v21 = vrot.slane %v1526_v20, 2 }
 0xa17   : > { %v1528_v10 = vadd.f32 %v1527_v21, %v1526_v20 }
 0xa19   : > { %v1529_v22 = vrot.slane %v1528_v10, 1 }
 0xa1b   : > { %v1530_v23 = vadd.f32 %v1529_v22, %v1528_v10 }
 0xa1d   : > { %v1531_v24 = vmul.f32 0.125, %v1530_v23 }
 0xa1f   : > { %v1532_v25 = vsub.f32 %v1523_v16, %v1531_v24 }
 0xa21   : > { %v1533_v26 = vmul.f32 %v1532_v25, %v1532_v25 }
 0xa23   : > { %v1534_v27 = vsel %vm633_vm2, %v1533_v26, 0.0 }
 0xa24   : > { %v1535_v28 = vrot.slane %v1534_v27, 4 }
 0xa26   : > { %v1536_v29 = vadd.f32 %v1535_v28, %v1534_v27 }
 0xa28   : > { %v1537_v30 = vrot.slane %v1536_v29, 2 }
 0xa2a   : > { %v1538_v31 = vadd.f32 %v1537_v30, %v1536_v29 }
 0xa2c   : > { %v1539_v32 = vrot.slane %v1538_v31, 1 }
 0xa2e   : > { %v1540_v33 = vadd.f32 %v1539_v32, %v1538_v31 }
 0xa30   : > { %v1541_v34 = vmul.f32 0.125, %v1540_v33 }
 0xa32   : > { %v1542_v35 = vadd.f32 1e-05, %v1541_v34 }
 0xa34   : > { %2037 = vrsqrt.f32 %v1542_v35 }
 0xa3e   : > { %v2038_v36 = vpop.eup %2037 }
 0xa3f   : > { %v1544_v38 = vmul.f32 %v2038_v36, %v1532_v25 }
 0xa41   : > { %v1550_v40 = vmul.f32 %v1774_v37, %v1544_v38 }
 0xa43   : > { %v1556_v41 = vadd.f32 %v1775_v39, %v1550_v40 }
 0xa45   : > { %1557 = vst.msk [vmem:[#allocation10] sm:$0xff] %vm633_vm2, %v1556_v41 }
 0xa46   : > { %2166 = shalt.err (!%p2163_p7)
}
 0xa47   : > { %s2743_s5 = sld [smem:[#allocation22_spill]] }
 0xa4d   : > { %s2167_s0 = scalar_lea.hbm %s2743_s5, 128 }
 0xa4e   : > { %p2168_p1 = scmp.ne.s32.totalorder %s2743_s5, %s2167_s0  ;;  %p2173_p8 = scmp.lt.u32.totalorder %s2167_s0, %s2743_s5 }
 0xa50   : > { %p2169_p4 = pnand %p2168_p1, %p1960_p12 }
 0xa52   : > { %p2170_p5 = pneg %p2169_p4 }
 0xa54   : > { %p2175_p6 = pnand %p2173_p8, %p2170_p5 }
 0xa56   : > { %2178 = shalt.err (!%p2175_p6)
}
 0xa57   : > { %1936 = dma.vmem_to_hbm [thread:$0]  (%p1960_p12), %s1566_s14, 128, %s2743_s5, [#allocation4]  }
 0xa58   : > { %2208 = dma.done.wait (%p1960_p12), [#allocation4], 128  }
 0xa59   : > { %2210 = vsyncadd (%p1960_p12), [#allocation4], 4294967168 }
 0xa5a PF: > { %p26_p10 = scmp.ge.s32.totalorder %s2434_s13, 4   ;;  %s2744_s25 = smov %s2217_s26 }
 0xa5b   : > { %s2745_s26 = smov %s2221_s27  ;;  %s2746_s27 = smov %s2444_s17 }
 0xa5c   : > { %s2747_s28 = smov %s2434_s13  ;;  %28 = sbr.rel (!%p26_p10) target bundleno = 15 (0xf), region = 144 }
 0xa63   :  { %1578 = vsyncpa [#allocation3], 1 }
 0xa64   :  { %1580 = vsyncpa [#allocation3 + $0x1], 1 }
 0xa65   :  { %1581 = vsyncpa [#allocation6], 1 }
 0xa66   :  { %1582 = vsyncpa [#allocation9], 1 }
 0xa67   :  { %1584 = vsyncpa [#allocation9 + $0x1], 1 }
 0xa68   :  { %1585 = vsyncpa [#allocation4], 1 }
 0xa69   :  { %1587 = vsyncpa [#allocation4 + $0x1], 1 }

</bundles_post_ra>
